<compile_context>
chip_gen: v6e
topology: v6e:2x2x1
jax: 0.10.0
libtpu: 0.0.40
codegen_flags: <defaults>
</compile_context>

<pallas_src>
import math
import numpy as np
import jax
import jax.numpy as jnp
from jax.experimental import pallas as pl
from jax.experimental.pallas import tpu as pltpu


def _policy_transform_kernel(mean_ref, log_std_ref, eps_ref, low_ref, scale_ref,
                             nls_ref, act_o, logp_o):
    # Load in native dtype, compute in f32.
    mean = mean_ref[...].astype(jnp.float32)          # [tB, A]
    log_std = log_std_ref[...].astype(jnp.float32)    # [tB, A]
    eps = eps_ref[...].astype(jnp.float32)            # [tB, A]
    low = low_ref[...]                                # [1, A]  (broadcast)
    scale = scale_ref[...]                            # [1, A]  (broadcast)
    nls_c = nls_ref[...]                              # [1, A]  -(log(scale)+0.5*log(2pi))

    # Base rsample: x ~ Normal(mean, std)
    std = jnp.exp(log_std)
    x = mean + std * eps

    # One transcendental serves both the sigmoid and the softplus log|det J|.
    e = jnp.exp(-jnp.abs(x))                          # exp(-|x|)  in (0, 1]
    one_plus_e = 1.0 + e
    r = pl.reciprocal(one_plus_e, approx=True)        # EUP vrcp
    sig = jnp.where(x >= 0.0, r, e * r)               # sigmoid(x)

    # SigmoidTransform followed by AffineTransform(loc=low, scale=scale)
    act_o[...] = (low + scale * sig).astype(act_o.dtype)

    # log|det J|_sigmoid = -(softplus(x) + softplus(-x)) = -(2*softplus(x) - x)
    sp_pos = jnp.maximum(x, 0.0) + jnp.log(one_plus_e)   # softplus(x)

    # Per-dim log_prob of the transformed distribution at the sampled action:
    #   base_lp - ldj_sigmoid - log(scale)
    logp_o[...] = (-0.5 * eps * eps - log_std + nls_c
                   + 2.0 * sp_pos - x).astype(logp_o.dtype)


def _pick_block_b(B, block_b):
    """Big tiles (amortize ~0.35us/step), multiple of 8, and >=2 grid steps
    when cheaply possible so v7x megacore can split the batch axis."""
    bb = min(block_b, B)
    if bb >= B and B >= 16 and (B // 2) % 8 == 0:
        bb = B // 2
    return max(8, bb)


def policy_forward(mean, log_std, eps, limits, *, block_b=512):
    """Applies the Policy transform (sigmoid + affine to `limits`) to a
    diagonal-Gaussian base distribution parameterised by (mean, log_std).
    Returns the squashed rsample and its per-dimension log-prob."""
    B, A = mean.shape
    bb = _pick_block_b(B, block_b)
    grid = (pl.cdiv(B, bb),)

    # Hoisted transform constants (trace-time, tiny [1, A] blocks):
    #   loc = limits[0], scale = limits[1] - limits[0].
    low = limits[0:1, :].astype(jnp.float32)                          # [1, A]
    scale = (limits[1] - limits[0])[None, :].astype(jnp.float32)      # [1, A]
    nls_c = -(jnp.log(scale) + jnp.float32(0.5 * math.log(2.0 * math.pi)))

    tile = lambda: pl.BlockSpec((bb, A), lambda i: (i, 0))
    const = lambda: pl.BlockSpec((1, A), lambda i: (0, 0))

    in_bytes = (mean.size * mean.dtype.itemsize
                + log_std.size * log_std.dtype.itemsize
                + eps.size * eps.dtype.itemsize
                + 3 * A * 4)
    out_bytes = 2 * B * A * 4
    cost = pl.CostEstimate(flops=20 * B * A,
                           transcendentals=4 * B * A,
                           bytes_accessed=in_bytes + out_bytes)

    act, logp = pl.pallas_call(
        _policy_transform_kernel,
        out_shape=(jax.ShapeDtypeStruct((B, A), jnp.float32),
                   jax.ShapeDtypeStruct((B, A), jnp.float32)),
        grid=grid,
        in_specs=[tile(), tile(), tile(), const(), const(), const()],
        out_specs=(tile(), tile()),
        compiler_params=pltpu.CompilerParams(
            dimension_semantics=("parallel",),
            vmem_limit_bytes=32 * 1024 * 1024),
        cost_estimate=cost,
    )(mean, log_std, eps, low, scale, nls_c)

    return dict(action=act, log_prob=logp)


if __name__ == "__main__":
    key = jax.random.PRNGKey(0)
    B, S, A = 64, 32, 128         # batch, state dim, action dim (lane-dense)
    ks = jax.random.split(key, 4)

    s = jax.random.normal(ks[0], (B, S), jnp.float32)

    # Stand-in base_policy: linear diagonal-Gaussian head over the state
    # (plain JAX; the Pallas kernel implements Policy's transform math).
    W = 0.1 * jax.random.normal(ks[1], (S, 2 * A), jnp.float32)
    b = 0.1 * jax.random.normal(ks[2], (2 * A,), jnp.float32)
    h = s @ W + b
    mean = h[:, :A].astype(jnp.bfloat16)                       # native bf16 feed
    log_std = jnp.clip(h[:, A:], -5.0, 2.0).astype(jnp.bfloat16)

    eps = jax.random.normal(ks[3], (B, A), jnp.float32)        # rsample noise

    # Action limits (per-dimension), matching self.limits[0]/self.limits[1].
    low = jnp.linspace(-2.0, -1.0, A, dtype=jnp.float32)
    high = jnp.linspace(1.0, 2.0, A, dtype=jnp.float32)
    limits = jnp.stack([low, high], axis=0)                    # [2, A]

    out = policy_forward(mean, log_std, eps, limits)
    jax.tree_util.tree_map(jax.block_until_ready, out)

    # --- pure-JAX reference of the TransformedDistribution semantics ---------
    mean_f = mean.astype(jnp.float32)
    log_std_f = log_std.astype(jnp.float32)
    std_f = jnp.exp(log_std_f)
    x = mean_f + std_f * eps
    act_ref = low[None, :] + (high - low)[None, :] * jax.nn.sigmoid(x)
    logp_ref = (-0.5 * eps ** 2 - log_std_f - 0.5 * math.log(2.0 * math.pi)
                - (jax.nn.log_sigmoid(x) + jax.nn.log_sigmoid(-x))
                - jnp.log(high - low)[None, :])

    # Action uses the approx EUP reciprocal -> slightly looser tolerance.
    np.testing.assert_allclose(np.asarray(out["action"]), np.asarray(act_ref),
                               rtol=1e-2, atol=1e-2)
    np.testing.assert_allclose(np.asarray(out["log_prob"]), np.asarray(logp_ref),
                               rtol=1e-3, atol=1e-3)

    # Actions must lie (essentially) inside the limits (sigmoid squash).
    act_np = np.asarray(out["action"])
    assert np.all(act_np > np.asarray(low)[None, :] - 1e-2)
    assert np.all(act_np < np.asarray(high)[None, :] + 1e-2)

    print("KERNEL_OK")
</pallas_src>

<mosaic_0001>
module attributes {stable_mosaic.version = 11 : i64} {
  func.func @_policy_transform_kernel(%arg0: i32, %arg1: memref<32x128xbf16, #tpu.memory_space<vmem>>, %arg2: memref<32x128xbf16, #tpu.memory_space<vmem>>, %arg3: memref<32x128xf32, #tpu.memory_space<vmem>>, %arg4: memref<1x128xf32, #tpu.memory_space<vmem>>, %arg5: memref<1x128xf32, #tpu.memory_space<vmem>>, %arg6: memref<1x128xf32, #tpu.memory_space<vmem>>, %arg7: memref<32x128xf32, #tpu.memory_space<vmem>>, %arg8: memref<32x128xf32, #tpu.memory_space<vmem>>) attributes {dimension_semantics = [#tpu.dimension_semantics<parallel>], iteration_bounds = array<i64: 2>, scalar_prefetch = 0 : i64, scratch_operands = 0 : i64, tpu.core_type = #tpu.core_type<tc>, window_params = [{transform_indices = @transform_0, window_bounds = array<i64: 32, 128>}, {transform_indices = @transform_1, window_bounds = array<i64: 32, 128>}, {transform_indices = @transform_2, window_bounds = array<i64: 32, 128>}, {pipeline_mode = #tpu.pipeline_mode<synchronous>, transform_indices = @transform_3, window_bounds = array<i64: 1, 128>}, {pipeline_mode = #tpu.pipeline_mode<synchronous>, transform_indices = @transform_4, window_bounds = array<i64: 1, 128>}, {pipeline_mode = #tpu.pipeline_mode<synchronous>, transform_indices = @transform_5, window_bounds = array<i64: 1, 128>}, {transform_indices = @transform_6, window_bounds = array<i64: 32, 128>}, {transform_indices = @transform_7, window_bounds = array<i64: 32, 128>}]} {
    %c0 = arith.constant 0 : index
    %c0_0 = arith.constant 0 : index
    %0 = vector.load %arg1[%c0, %c0_0] : memref<32x128xbf16, #tpu.memory_space<vmem>>, vector<32x128xbf16>
    %1 = arith.extf %0 : vector<32x128xbf16> to vector<32x128xf32>
    %c0_1 = arith.constant 0 : index
    %c0_2 = arith.constant 0 : index
    %2 = vector.load %arg2[%c0_1, %c0_2] : memref<32x128xbf16, #tpu.memory_space<vmem>>, vector<32x128xbf16>
    %3 = arith.extf %2 : vector<32x128xbf16> to vector<32x128xf32>
    %c0_3 = arith.constant 0 : index
    %c0_4 = arith.constant 0 : index
    %4 = vector.load %arg3[%c0_3, %c0_4] : memref<32x128xf32, #tpu.memory_space<vmem>>, vector<32x128xf32>
    %c0_5 = arith.constant 0 : index
    %c0_6 = arith.constant 0 : index
    %5 = vector.load %arg4[%c0_5, %c0_6] : memref<1x128xf32, #tpu.memory_space<vmem>>, vector<1x128xf32>
    %c0_7 = arith.constant 0 : index
    %c0_8 = arith.constant 0 : index
    %6 = vector.load %arg5[%c0_7, %c0_8] : memref<1x128xf32, #tpu.memory_space<vmem>>, vector<1x128xf32>
    %c0_9 = arith.constant 0 : index
    %c0_10 = arith.constant 0 : index
    %7 = vector.load %arg6[%c0_9, %c0_10] : memref<1x128xf32, #tpu.memory_space<vmem>>, vector<1x128xf32>
    %8 = math.exp %3 : vector<32x128xf32>
    %9 = arith.mulf %8, %4 : vector<32x128xf32>
    %10 = arith.addf %1, %9 : vector<32x128xf32>
    %11 = math.absf %10 : vector<32x128xf32>
    %cst = arith.constant 0.000000e+00 : f32
    %12 = vector.broadcast %cst : f32 to vector<32x128xf32>
    %13 = arith.subf %12, %11 : vector<32x128xf32>
    %14 = math.exp %13 : vector<32x128xf32>
    %cst_11 = arith.constant 1.000000e+00 : f32
    %15 = vector.broadcast %cst_11 : f32 to vector<32x128xf32>
    %16 = arith.addf %15, %14 : vector<32x128xf32>
    %17 = tpu.reciprocal %16 {approx = true} : vector<32x128xf32> -> vector<32x128xf32>
    %cst_12 = arith.constant 0.000000e+00 : f32
    %18 = vector.broadcast %cst_12 : f32 to vector<32x128xf32>
    %19 = arith.cmpf oge, %10, %18 : vector<32x128xf32>
    %20 = arith.mulf %14, %17 : vector<32x128xf32>
    %21 = arith.select %19, %17, %20 : vector<32x128xi1>, vector<32x128xf32>
    %22 = vector.broadcast %6 : vector<1x128xf32> to vector<32x128xf32>
    %23 = arith.mulf %22, %21 : vector<32x128xf32>
    %24 = vector.broadcast %5 : vector<1x128xf32> to vector<32x128xf32>
    %25 = arith.addf %24, %23 : vector<32x128xf32>
    %c0_13 = arith.constant 0 : index
    %c0_14 = arith.constant 0 : index
    %26 = vector.load %arg7[%c0_13, %c0_14] : memref<32x128xf32, #tpu.memory_space<vmem>>, vector<32x128xf32>
    tpu.vector_store %arg7[%c0_13, %c0_14], %25 {strides = array<i32>} : memref<32x128xf32, #tpu.memory_space<vmem>>, vector<32x128xf32>,
    %cst_15 = arith.constant 0.000000e+00 : f32
    %27 = vector.broadcast %cst_15 : f32 to vector<32x128xf32>
    %28 = arith.maximumf %10, %27 : vector<32x128xf32>
    %29 = math.log %16 : vector<32x128xf32>
    %30 = arith.addf %28, %29 : vector<32x128xf32>
    %cst_16 = arith.constant -5.000000e-01 : f32
    %31 = vector.broadcast %cst_16 : f32 to vector<32x128xf32>
    %32 = arith.mulf %31, %4 : vector<32x128xf32>
    %33 = arith.mulf %32, %4 : vector<32x128xf32>
    %34 = arith.subf %33, %3 : vector<32x128xf32>
    %35 = vector.broadcast %7 : vector<1x128xf32> to vector<32x128xf32>
    %36 = arith.addf %34, %35 : vector<32x128xf32>
    %cst_17 = arith.constant 2.000000e+00 : f32
    %37 = vector.broadcast %cst_17 : f32 to vector<32x128xf32>
    %38 = arith.mulf %37, %30 : vector<32x128xf32>
    %39 = arith.addf %36, %38 : vector<32x128xf32>
    %40 = arith.subf %39, %10 : vector<32x128xf32>
    %c0_18 = arith.constant 0 : index
    %c0_19 = arith.constant 0 : index
    %41 = vector.load %arg8[%c0_18, %c0_19] : memref<32x128xf32, #tpu.memory_space<vmem>>, vector<32x128xf32>
    tpu.vector_store %arg8[%c0_18, %c0_19], %40 {strides = array<i32>} : memref<32x128xf32, #tpu.memory_space<vmem>>, vector<32x128xf32>,
    return
  }
  func.func @transform_0(%arg0: i32) -> (i32, i32) {
    %c0_i32 = arith.constant 0 : i32
    %c0_i32_0 = arith.constant 0 : i32
    return %arg0, %c0_i32 : i32, i32
  }
  func.func @transform_1(%arg0: i32) -> (i32, i32) {
    %c0_i32 = arith.constant 0 : i32
    %c0_i32_0 = arith.constant 0 : i32
    return %arg0, %c0_i32 : i32, i32
  }
  func.func @transform_2(%arg0: i32) -> (i32, i32) {
    %c0_i32 = arith.constant 0 : i32
    %c0_i32_0 = arith.constant 0 : i32
    return %arg0, %c0_i32 : i32, i32
  }
  func.func @transform_3(%arg0: i32) -> (i32, i32) {
    %c0_i32 = arith.constant 0 : i32
    %c0_i32_0 = arith.constant 0 : i32
    %c0_i32_1 = arith.constant 0 : i32
    return %c0_i32, %c0_i32_0 : i32, i32
  }
  func.func @transform_4(%arg0: i32) -> (i32, i32) {
    %c0_i32 = arith.constant 0 : i32
    %c0_i32_0 = arith.constant 0 : i32
    %c0_i32_1 = arith.constant 0 : i32
    return %c0_i32, %c0_i32_0 : i32, i32
  }
  func.func @transform_5(%arg0: i32) -> (i32, i32) {
    %c0_i32 = arith.constant 0 : i32
    %c0_i32_0 = arith.constant 0 : i32
    %c0_i32_1 = arith.constant 0 : i32
    return %c0_i32, %c0_i32_0 : i32, i32
  }
  func.func @transform_6(%arg0: i32) -> (i32, i32) {
    %c0_i32 = arith.constant 0 : i32
    %c0_i32_0 = arith.constant 0 : i32
    return %arg0, %c0_i32 : i32, i32
  }
  func.func @transform_7(%arg0: i32) -> (i32, i32) {
    %c0_i32 = arith.constant 0 : i32
    %c0_i32_0 = arith.constant 0 : i32
    return %arg0, %c0_i32 : i32, i32
  }
}

</mosaic_0001>

<bundles_post_ra>
// kernel: tpu_custom_call.1
= control target key start
LH: loop header
LB: loop body
LE: loop exit
PB: predicated region body
PF: predicated region fallthrough
CT: control target
= control target key end

     0   :  { %s1482_s0 = inlined_call_operand.hbm [shape: bf16[64,128], index: 0, kind: input, shape index: {}]   ;;  %s1483_s1 = inlined_call_operand.hbm [shape: bf16[64,128], index: 1, kind: input, shape index: {}]   ;;  %s1484_s2 = inlined_call_operand.hbm [shape: f32[64,128], index: 2, kind: input, shape index: {}]   ;;  %s1485_s3 = inlined_call_operand.vmem [shape: f32[1,128], index: 3, kind: input, shape index: {}]   ;;  %s1486_s4 = inlined_call_operand.vmem [shape: f32[1,128], index: 4, kind: input, shape index: {}]   ;;  %s1487_s5 = inlined_call_operand.vmem [shape: f32[1,128], index: 5, kind: input, shape index: {}]   ;;  %s1488_s6 = inlined_call_operand.hbm [shape: f32[64,128], index: 6, kind: output, shape index: {0}]   ;;  %s1489_s7 = inlined_call_operand.hbm [shape: f32[64,128], index: 7, kind: output, shape index: {1}]  }
   0x1   :  { %1499 = sst [smem:[#allocation18_spill]] %s1482_s0 }
   0x2   :  { %1500 = sst [smem:[#allocation19_spill]] %s1483_s1 }
   0x3   :  { %13 = vsyncpa [#allocation3], 0 }
   0x4   :  { %15 = vsyncpa [#allocation3 + $0x1], 0 }
   0x5   :  { %16 = vsyncpa [#allocation6], 0 }
   0x6   :  { %18 = vsyncpa [#allocation6 + $0x1], 0 }
   0x7   :  { %19 = vsyncpa [#allocation4], 0 }
   0x8   :  { %21 = vsyncpa [#allocation4 + $0x1], 0 }
   0x9   :  { %22 = vsyncpa [#allocation10], 0 }
   0xa   :  { %24 = vsyncpa [#allocation10 + $0x1], 0  ;;  %s1112_s24 = smov 0   ;;  %s1114_s25 = smov 0  }
   0xb   :  { %s1116_s26 = smov 0   ;;  %s1118_s27 = smov 0  }
   0xc LB: > { %1501 = sst [smem:[#allocation15_spill]] %s1055_s26  ;;  %s1133_s28 = sadd.s32 4294967295, %s1059_s27   ;;  %s1059_s27 = sphi %s1118_s27, %s1522_s27   ;;  %s1055_s26 = sphi %s1116_s26, %s1524_s26   ;;  %s1051_s25 = sphi %s1114_s25, %s1526_s25   ;;  %s1047_s24 = sphi %s1112_s24, %s1525_s24  }
   0xd   : > { %s726_s29 = sadd.s32 4294967294, %s1059_s27   ;;  %s1137_s30 = sadd.s32 1, %s1059_s27  }
   0xe   : > { %1502 = sst [smem:[#allocation16_spill]] %s1137_s30  ;;  %s37_s8 = sadd.s32 1, %s1055_s26 }
   0xf   : > { %s34_s9 = ssub.s32 %s1059_s27, %s1137_s30  ;;  %p44_p0 = scmp.ne.s32.totalorder %s1055_s26, %s1051_s25 }
  0x10   : > { %p35_p1 = scmp.eq.s32.totalorder %s34_s9, 0  ;;  %p45_p2 = scmp.eq.s32.totalorder %s1059_s27, 0 }
  0x11   : > { %p50_p3 = scmp.ne.s32.totalorder %s1051_s25, %s1047_s24  ;;  %p51_p4 = scmp.eq.s32.totalorder %s1133_s28, 0 }
  0x12   : > { %s1149_s10 = scalar_select %p35_p1, %s1055_s26, %s37_s8  }
  0x13   : > { %p46_p5 = por %p45_p2, %p44_p0  ;;  %p1151_p6 = por %p51_p4, %p50_p3 }
  0x14   : > { %1503 = sst [smem:[#allocation17_spill]] %s1149_s10  ;;  %p189_p7 = scmp.eq.s32.totalorder %s1133_s28, 1 }
  0x15   : > { %s1504_s11 = scalar_select %p1151_p6, 1, 0 }
  0x16   : > { %p195_p8 = scmp.eq.s32.totalorder %s726_s29, 1  ;;  %p805_p10 = scmp.lt.s32.totalorder %s1059_s27, 2 }
  0x17   : > { %p1158_p11 = por %p189_p7, %p44_p0  ;;  %s1167_s14 = sand.u32 1, %s1055_s26  }
  0x18   : > { %p1162_p12 = por %p195_p8, %p50_p3  ;;  %s1491_s15 = sshll.u32 %s1059_s27, 8 }
  0x19   : > { %s1505_s12 = scalar_select %p1158_p11, 1, 0 }
  0x1a   : > { %s1506_s13 = scalar_select %p1162_p12, 1, 0 }
  0x1b   : > { %s1490_s16 = sshll.u32 %s1167_s14, 4  ;;  %p1171_p13 = pnand %p805_p10, %p46_p5 }
  0x1c   : > { %s271_s18 = sand.u32 1, %s1059_s27   ;;  %s1508_s1 = sld [smem:[#allocation19_spill]] }
  0x1d   : > { %s275_s22 = scalar_lea.vmem [#allocation5], %s1490_s16  ;;  %s1188_s29 = scalar_lea.sflag [#allocation6], %s271_s18 }
  0x1e   : > { %s282_s23 = sshll.u32 %s275_s22, 4  ;;  %p1194_p2 = pneg %p1171_p13  ;;  %s1185_s23 = int_to_ptr.vmem [resolvable:$true] %s282_s23 }
  0x22   : > { %s1181_s21 = scalar_lea.hbm %s1508_s1, %s1491_s15  ;;  %s882_s22 = scalar_lea.hbm %s1508_s1, 512 }
  0x23   : > { %s877_s8 = scalar_lea.hbm %s1181_s21, 256  ;;  %p883_p5 = scmp.lt.s32.totalorder %s1181_s21, %s1508_s1 }
  0x24   : > { %p878_p1 = scmp.ne.s32.totalorder %s1181_s21, %s877_s8  ;;  %p884_p7 = scmp.lt.s32.totalorder %s882_s22, %s877_s8 }
  0x26   : > { %p880_p3 = pnand %p1194_p2, %p878_p1  ;;  %p885_p8 = por %p884_p7, %p883_p5 }
  0x28   : > { %p881_p4 = pneg %p880_p3 }
  0x2a   : > { %p886_p10 = pnand %p885_p8, %p881_p4 }
  0x2c   : > { %889 = shalt.err (!%p886_p10)
}
  0x2d   : > { %s890_s18 = scalar_lea.vmem %s1185_s23, 256  ;;  %s1061_s10 = smov [#allocation5]  }
  0x2e   : > { %p891_p9 = scmp.ne.s32.totalorder %s1185_s23, %s890_s18  ;;  %s895_s19 = sshll.u32 %s1061_s10, 4  ;;  %s896_s19 = int_to_ptr.vmem [resolvable:$false] %s895_s19 }
  0x2f   : > { %s897_s20 = scalar_lea.vmem %s896_s19, 512  ;;  %p898_p0 = scmp.lt.s32.totalorder %s1185_s23, %s896_s19 }
  0x30   : > { %p893_p1 = pnand %p891_p9, %p1194_p2  ;;  %p899_p12 = scmp.lt.s32.totalorder %s897_s20, %s890_s18 }
  0x32   : > { %p894_p3 = pneg %p893_p1  ;;  %p900_p11 = por %p899_p12, %p898_p0 }
  0x34   : > { %p901_p6 = pnand %p900_p11, %p894_p3 }
  0x36   : > { %904 = shalt.err (!%p901_p6)
}
  0x37   : > { %s1495_s15 = smov 64   ;;  %s1496_s10 = smov 4  }
  0x38   : > { %794 = dma.hbm_to_vmem [thread:$0]  (!%p1171_p13), %s1181_s21, 256, %s1185_s23, %s1188_s29, %s1495_s15, %s1495_s15, %s1496_s10  }
  0x39   : > { %p311_p9 = scmp.lt.s32.totalorder %s1059_s27, 3  ;;  %s1510_s16 = sshll.u32 %s1059_s27, 8 }
  0x3a   : > { %s1511_s0 = sld [smem:[#allocation18_spill]]  ;;  %p1512_p6 = scmp.ge.s32.totalorder %s1059_s27, 1 }
  0x3b   : > { %s1514_s20 = sshll.u32 %s1167_s14, 4  ;;  %s735_s21 = sshll.u32 %s1167_s14, 5 }
  0x3c   : > { %p1230_p11 = pnand %p1512_p6, %p311_p9  ;;  %s254_s1 = scalar_lea.vmem [#allocation2], %s1514_s20 }
  0x3d   : > { %s261_s26 = sshll.u32 %s254_s1, 4  ;;  %s251_s23 = scalar_lea.sflag [#allocation3], %s1167_s14  ;;  %s1236_s26 = int_to_ptr.vmem [resolvable:$true] %s261_s26 }
  0x3e   : > { %s1513_s19 = scalar_select %p1230_p11, 1, 0 }
  0x40   : > { %s1226_s18 = scalar_lea.hbm %s1511_s0, %s1510_s16  ;;  %s910_s22 = scalar_lea.hbm %s1511_s0, 512 }
  0x41   : > { %s905_s15 = scalar_lea.hbm %s1226_s18, 256  ;;  %p911_p5 = scmp.lt.s32.totalorder %s1226_s18, %s1511_s0 }
  0x42   : > { %p906_p12 = scmp.ne.s32.totalorder %s1226_s18, %s905_s15  ;;  %p912_p7 = scmp.lt.s32.totalorder %s910_s22, %s905_s15 }
  0x44   : > { %p908_p0 = pnand %p906_p12, %p1194_p2  ;;  %p913_p8 = por %p912_p7, %p911_p5 }
  0x46   : > { %p909_p4 = pneg %p908_p0 }
  0x48   : > { %p914_p10 = pnand %p913_p8, %p909_p4 }
  0x4a   : > { %917 = shalt.err (!%p914_p10)
}
  0x4b   : > { %s918_s1 = scalar_lea.vmem %s1236_s26, 256  ;;  %s1064_s20 = smov [#allocation2]  }
  0x4c   : > { %p919_p1 = scmp.ne.s32.totalorder %s1236_s26, %s918_s1  ;;  %s923_s16 = sshll.u32 %s1064_s20, 4  ;;  %s924_s16 = int_to_ptr.vmem [resolvable:$false] %s923_s16 }
  0x4d   : > { %s925_s8 = scalar_lea.vmem %s924_s16, 512  ;;  %p926_p6 = scmp.lt.s32.totalorder %s1236_s26, %s924_s16 }
  0x4e   : > { %p921_p3 = pnand %p919_p1, %p1194_p2  ;;  %p927_p12 = scmp.lt.s32.totalorder %s925_s8, %s918_s1 }
  0x50   : > { %p922_p9 = pneg %p921_p3  ;;  %p928_p0 = por %p927_p12, %p926_p6 }
  0x52   : > { %p929_p11 = pnand %p928_p0, %p922_p9 }
  0x54   : > { %932 = shalt.err (!%p929_p11)
}
  0x55   : > { %s1515_s30 = smov 4   ;;  %s1516_s15 = smov 64  }
  0x56   : > { %791 = dma.hbm_to_vmem [thread:$0]  (!%p1171_p13), %s1226_s18, 256, %s1236_s26, %s251_s23, %s1516_s15, %s1516_s15, %s1515_s30  }
  0x57   : > { %s757_s10 = sshll.u32 %s1059_s27, 9  ;;  %s296_s1 = scalar_lea.vmem [#allocation7], %s735_s21 }
  0x58   : > { %s1267_s16 = scalar_lea.hbm %s1484_s2, %s757_s10  ;;  %s303_s8 = sshll.u32 %s296_s1, 4  ;;  %s1271_s8 = int_to_ptr.vmem [resolvable:$true] %s303_s8 }
  0x59   : > { %s933_s0 = scalar_lea.hbm %s1267_s16, 512  ;;  %s938_s23 = scalar_lea.hbm %s1484_s2, 1024 }
  0x5a   : > { %p934_p11 = scmp.ne.s32.totalorder %s1267_s16, %s933_s0  ;;  %p939_p7 = scmp.lt.s32.totalorder %s1267_s16, %s1484_s2 }
  0x5b   : > { %p940_p8 = scmp.lt.s32.totalorder %s938_s23, %s933_s0 }
  0x5c   : > { %p936_p4 = pnand %p934_p11, %p1194_p2 }
  0x5d   : > { %p941_p10 = por %p940_p8, %p939_p7 }
  0x5e   : > { %p937_p5 = pneg %p936_p4 }
  0x60   : > { %p942_p1 = pnand %p941_p10, %p937_p5 }
  0x62   : > { %945 = shalt.err (!%p942_p1)
}
  0x63   : > { %s946_s14 = scalar_lea.vmem %s1271_s8, 512  ;;  %s1065_s21 = smov [#allocation7]  }
  0x64   : > { %p947_p3 = scmp.ne.s32.totalorder %s1271_s8, %s946_s14  ;;  %s951_s10 = sshll.u32 %s1065_s21, 4  ;;  %s952_s10 = int_to_ptr.vmem [resolvable:$false] %s951_s10 }
  0x65   : > { %s953_s22 = scalar_lea.vmem %s952_s10, 1024  ;;  %p954_p12 = scmp.lt.s32.totalorder %s1271_s8, %s952_s10 }
  0x66   : > { %p949_p9 = pnand %p947_p3, %p1194_p2  ;;  %p955_p0 = scmp.lt.s32.totalorder %s953_s22, %s946_s14 }
  0x68   : > { %p950_p6 = pneg %p949_p9  ;;  %p956_p11 = por %p955_p0, %p954_p12 }
  0x6a   : > { %p957_p4 = pnand %p956_p11, %p950_p6 }
  0x6c   : > { %960 = shalt.err (!%p957_p4)
}
  0x6d   : > { %s1066_s0 = smov 128   ;;  %s1067_s20 = smov 8  }
  0x6e   : > { %797 = dma.hbm_to_vmem [thread:$0]  (!%p1171_p13), %s1267_s16, 512, %s1271_s8, %s1188_s29, %s1066_s0, %s1066_s0, %s1067_s20  }
  0x6f   : > { %p1517_p2 = scmp.ne.s32.totalorder %s1513_s19, 0 }
  0x70   : > { %s1297_s9 = sand.u32 (!%p1517_p2), 1, %s1051_s25   ;;  %p1518_p5 = scmp.ne.s32.totalorder (!%p1517_p2), %s1504_s11, 0 }
  0x71   : > { %315 = sbr.rel (%p1517_p2) target bundleno = 228 (0xe4), region = 44  ;;  %s739_s1 = sshll.u32 (!%p1517_p2), %s1297_s9, 4 }
  0x72   : > { %s318_s26 = scalar_lea.sflag (!%p1517_p2), [#allocation3], %s1297_s9  ;;  %s321_s18 = scalar_lea.vmem (!%p1517_p2), [#allocation2], %s739_s1 }
  0x76   : > { %1030 = dma.done.wait (%p1518_p5), %s318_s26, 256  }
  0x77   : > { %1032 = vsyncadd (%p1518_p5), %s318_s26, 4294967040  ;;  %s326_s17 = sand.u32 1, %s1133_s28   ;;  %s330_s19 = scalar_lea.vmem [#allocation5], %s739_s1 }
  0x78   : > { %s327_s29 = scalar_lea.sflag [#allocation6], %s326_s17 }
  0x79   : > { %1034 = dma.done.wait (%p1518_p5), %s327_s29, 768  }
  0x7a   : > { %1036 = vsyncadd (%p1518_p5), %s327_s29, 4294966528  ;;  %v1310_v0 = vld [vmem:[%s330_s19] sm:$0xff]   ;;  %v1312_v1 = vld [vmem:[%s330_s19 + $0x8] sm:$0xff]   ;;  %s1327_s11 = sshll.u32 %s1297_s9, 5  ;;  %s758_s0 = sshll.u32 %s1133_s28, 9 }
  0x7b   : > { %v770_v2 = vunpack.c.l.bf16 %v1310_v0  ;;  %v771_v3 = vunpack.c.h.bf16 %v1310_v0  ;;  %v774_v4 = vunpack.c.l.bf16 %v1312_v1  ;;  %v775_v5 = vunpack.c.h.bf16 %v1312_v1  ;;  %v761_v10 = vld [vmem:[%s321_s18] sm:$0xff]   ;;  %s339_s16 = scalar_lea.vmem [#allocation7], %s1327_s11  ;;  %v776_v12 = vld [vmem:[%s321_s18 + $0x8] sm:$0xff]   ;;  %s1369_s10 = scalar_lea.vmem [#allocation8], %s1327_s11 }
  0x7c   : > { %v406_v11 = vld [vmem:[%s339_s16] sm:$0xff]  ;;  %v762_v13 = vunpack.c.l.bf16 %v761_v10  ;;  %v407_v14 = vld [vmem:[%s339_s16 + $0x8] sm:$0xff]  ;;  %v408_v16 = vld [vmem:[%s339_s16 + $0x10] sm:$0xff]  ;;  %v763_v17 = vunpack.c.h.bf16 %v761_v10  ;;  %v766_v21 = vunpack.c.l.bf16 %v776_v12  ;;  %v767_v24 = vunpack.c.h.bf16 %v776_v12  ;;  %s562_s22 = sshll.u32 %s1369_s10, 4  ;;  %s1386_s26 = scalar_lea.hbm %s1488_s6, %s758_s0  ;;  %s1379_s22 = int_to_ptr.vmem [resolvable:$true] %s562_s22 }
  0x7d   : > { %v413_v6 = vmul.f32 1.442695, %v770_v2  ;;  %v415_v7 = vmul.f32 1.442695, %v771_v3  ;;  %v417_v8 = vmul.f32 1.442695, %v774_v4 }
  0x7e   : > { %v419_v9 = vmul.f32 1.442695, %v775_v5  ;;  %v409_v19 = vld [vmem:[%s339_s16 + $0x18] sm:$0xff]  ;;  %v505_v52 = vmul.f32 -0.5, %v406_v11  ;;  %v506_v54 = vmul.f32 -0.5, %v407_v14  ;;  %v507_v55 = vmul.f32 -0.5, %v408_v16 }
  0x7f   : > { %845 = vpow2.f32 %v413_v6  ;;  %v508_v56 = vmul.f32 -0.5, %v409_v19  ;;  %v746_v58 = vld [vmem:[%s1487_s5] ss:$0 sm:$0xff]  ;;  %s1392_s18 = scalar_lea.vmem [#allocation9], %s1327_s11  ;;  %s544_s29 = scalar_lea.sflag [#allocation4], %s1297_s9 }
  0x80   : > { %847 = vpow2.f32 %v415_v7  ;;  %v509_v53 = vmul.f32 %v505_v52, %v406_v11  ;;  %v510_v59 = vmul.f32 %v506_v54, %v407_v14  ;;  %v511_v60 = vmul.f32 %v507_v55, %v408_v16  ;;  %v744_v7 = vld [vmem:[%s1486_s4] ss:$0 sm:$0xff]  ;;  %s578_s17 = sshll.u32 %s1392_s18, 4  ;;  %s961_s19 = scalar_lea.vmem %s1379_s22, 512  ;;  %s1426_s17 = int_to_ptr.vmem [resolvable:$true] %s578_s17 }
  0x81   : > { %849 = vpow2.f32 %v417_v8  ;;  %v512_v61 = vmul.f32 %v508_v56, %v409_v19  ;;  %p962_p13 = scmp.ne.s32.totalorder %s1379_s22, %s961_s19  ;;  %p1519_p7 = scmp.ne.s32.totalorder %s1505_s12, 0 }
  0x82   : > { %851 = vpow2.f32 %v419_v9  ;;  %v513_v57 = vsub.f32 %v509_v53, %v770_v2  ;;  %v514_v2 = vsub.f32 %v510_v59, %v771_v3  ;;  %v515_v9 = vsub.f32 %v511_v60, %v774_v4  ;;  %s1068_s16 = smov [#allocation8]  }
  0x83   : > { %p963_p8 = pnand %p962_p13, %p1519_p7  ;;  %s965_s8 = sshll.u32 %s1068_s16, 4  ;;  %s966_s8 = int_to_ptr.vmem [resolvable:$false] %s965_s8 }
  0x84   : > { %v523_v63 = vadd.f32 %v746_v58, %v513_v57  ;;  %s967_s23 = scalar_lea.vmem %s966_s8, 1024  ;;  %p968_p1 = scmp.lt.s32.totalorder %s1379_s22, %s966_s8 }
  0x85   : > { %p964_p10 = pneg %p963_p8  ;;  %p969_p3 = scmp.lt.s32.totalorder %s967_s23, %s961_s19 }
  0x87   : > { %p970_p9 = por %p969_p3, %p968_p1 }
  0x89   : > { %p971_p6 = pnand %p970_p9, %p964_p10 }
  0x8c   : > { %v846_v15 = vpop.eup %845 }
  0x8d   : > { %v848_v18 = vpop.eup %847  ;;  %v421_v20 = vmul.f32 %v846_v15, %v406_v11  ;;  %v745_v15 = vld [vmem:[%s1485_s3] ss:$0 sm:$0xff] }
  0x8e   : > { %v850_v22 = vpop.eup %849  ;;  %v422_v23 = vmul.f32 %v848_v18, %v407_v14 }
  0x8f   : > { %v852_v25 = vpop.eup %851  ;;  %v423_v26 = vmul.f32 %v850_v22, %v408_v16  ;;  %v1330_v27 = vadd.f32 %v762_v13, %v421_v20  ;;  %v516_v13 = vsub.f32 %v512_v61, %v775_v5 }
  0x90   : > { %v424_v28 = vmul.f32 %v852_v25, %v409_v19  ;;  %v1332_v29 = vadd.f32 %v763_v17, %v422_v23 }
  0x91   : > { %v429_v30 = vand.u32 2147483647, %v1330_v27  ;;  %v1335_v31 = vadd.f32 %v766_v21, %v423_v26  ;;  %vm453_vm0 = vcmp.ge.f32.partialorder %v1330_v27, 0.0  ;;  %v489_v12 = vmax.f32 %v1330_v27, 0.0 }
  0x92   : > { %v430_v32 = vand.u32 2147483647, %v1332_v29  ;;  %v1338_v33 = vadd.f32 %v767_v24, %v424_v28  ;;  %vm454_vm1 = vcmp.ge.f32.partialorder %v1332_v29, 0.0  ;;  %v490_v4 = vmax.f32 %v1332_v29, 0.0 }
  0x93   : > { %v433_v34 = vsub.f32 0.0, %v429_v30  ;;  %v431_v35 = vand.u32 2147483647, %v1335_v31  ;;  %vm455_vm2 = vcmp.ge.f32.partialorder %v1335_v31, 0.0  ;;  %v491_v1 = vmax.f32 %v1335_v31, 0.0 }
  0x94   : > { %v434_v36 = vsub.f32 0.0, %v430_v32  ;;  %v432_v37 = vand.u32 2147483647, %v1338_v33  ;;  %vm456_vm3 = vcmp.ge.f32.partialorder %v1338_v33, 0.0  ;;  %v492_v23 = vmax.f32 %v1338_v33, 0.0 }
  0x95   : > { %v437_v38 = vmul.f32 1.442695, %v433_v34  ;;  %v435_v39 = vsub.f32 0.0, %v431_v35 }
  0x96   : > { %v439_v40 = vmul.f32 1.442695, %v434_v36  ;;  %v436_v41 = vsub.f32 0.0, %v432_v37 }
  0x97   : > { %853 = vpow2.f32 %v437_v38  ;;  %v441_v42 = vmul.f32 1.442695, %v435_v39 }
  0x98   : > { %855 = vpow2.f32 %v439_v40  ;;  %v443_v43 = vmul.f32 1.442695, %v436_v41  ;;  %v524_v40 = vadd.f32 %v746_v58, %v514_v2 }
  0x99   : > { %857 = vpow2.f32 %v441_v42 }
  0x9a   : > { %859 = vpow2.f32 %v443_v43 }
  0xa4   : > { %v854_v44 = vpop.eup %853 }
  0xa5   : > { %v856_v45 = vpop.eup %855  ;;  %v445_v46 = vadd.f32 1.0, %v854_v44 }
  0xa6   : > { %v858_v47 = vpop.eup %857  ;;  %v446_v48 = vadd.f32 1.0, %v856_v45 }
  0xa7   : > { %v860_v49 = vpop.eup %859  ;;  %861 = vrcp.f32 %v445_v46  ;;  %v447_v50 = vadd.f32 1.0, %v858_v47 }
  0xa8   : > { %863 = vrcp.f32 %v446_v48  ;;  %v448_v51 = vadd.f32 1.0, %v860_v49 }
  0xa9   : > { %865 = vrcp.f32 %v447_v50 }
  0xaa   : > { %867 = vrcp.f32 %v448_v51 }
  0xab   : > { %869 = vlog2.f32 %v445_v46 }
  0xac   : > { %871 = vlog2.f32 %v446_v48  ;;  %v526_v48 = vadd.f32 %v746_v58, %v516_v13 }
  0xad   : > { %873 = vlog2.f32 %v447_v50 }
  0xae   : > { %875 = vlog2.f32 %v448_v51 }
  0xb4   : > { %v862_v62 = vpop.eup %861 }
  0xb5   : > { %v864_v6 = vpop.eup %863  ;;  %v457_v8 = vmul.f32 %v862_v62, %v854_v44 }
  0xb6   : > { %v866_v10 = vpop.eup %865  ;;  %v458_v11 = vmul.f32 %v864_v6, %v856_v45  ;;  %v525_v45 = vadd.f32 %v746_v58, %v515_v9 }
  0xb7   : > { %v868_v14 = vpop.eup %867  ;;  %v461_v0 = vsel %vm453_vm0, %v862_v62, %v457_v8  ;;  %v459_v3 = vmul.f32 %v866_v10, %v858_v47 }
  0xb8   : > { %v870_v16 = vpop.eup %869  ;;  %v471_v17 = vmul.f32 %v744_v7, %v461_v0  ;;  %v462_v18 = vsel %vm454_vm1, %v864_v6, %v458_v11  ;;  %v460_v19 = vmul.f32 %v868_v14, %v860_v49 }
  0xb9   : > { %v872_v5 = vpop.eup %871  ;;  %v472_v20 = vmul.f32 %v744_v7, %v462_v18  ;;  %v463_v21 = vsel %vm455_vm2, %v866_v10, %v459_v3  ;;  %v494_v22 = vmul.f32 0.6931472, %v870_v16 }
  0xba   : > { %v874_v24 = vpop.eup %873  ;;  %v481_v25 = vadd.f32 %v745_v15, %v471_v17  ;;  %v473_v26 = vmul.f32 %v744_v7, %v463_v21  ;;  %v464_v28 = vsel %vm456_vm3, %v868_v14, %v460_v19  ;;  %v496_v30 = vmul.f32 0.6931472, %v872_v5 }
  0xbb   : > { %v876_v32 = vpop.eup %875  ;;  %v482_v34 = vadd.f32 %v745_v15, %v472_v20  ;;  %v474_v35 = vmul.f32 %v744_v7, %v464_v28  ;;  %v501_v36 = vadd.f32 %v494_v22, %v489_v12  ;;  %v498_v37 = vmul.f32 0.6931472, %v874_v24 }
  0xbc   : > { %485 = vst [vmem:[%s1369_s10] sm:$0xff] %v481_v25  ;;  %v483_v38 = vadd.f32 %v745_v15, %v473_v26  ;;  %v502_v39 = vadd.f32 %v496_v30, %v490_v4  ;;  %v500_v41 = vmul.f32 0.6931472, %v876_v32 }
  0xbd   : > { %486 = vst [vmem:[%s1369_s10 + $0x8] sm:$0xff] %v482_v34  ;;  %v484_v42 = vadd.f32 %v745_v15, %v474_v35  ;;  %v527_v43 = vmul.f32 2.0, %v501_v36  ;;  %v503_v44 = vadd.f32 %v498_v37, %v491_v1 }
  0xbe   : > { %487 = vst [vmem:[%s1369_s10 + $0x10] sm:$0xff] %v483_v38  ;;  %v528_v46 = vmul.f32 2.0, %v502_v39  ;;  %v504_v47 = vadd.f32 %v500_v41, %v492_v23 }
  0xbf   : > { %488 = vst [vmem:[%s1369_s10 + $0x18] sm:$0xff] %v484_v42  ;;  %v531_v49 = vadd.f32 %v527_v43, %v523_v63  ;;  %v529_v50 = vmul.f32 2.0, %v503_v44 }
  0xc0   : > { %v532_v51 = vadd.f32 %v528_v46, %v524_v40  ;;  %v530_v52 = vmul.f32 2.0, %v504_v47 }
  0xc1   : > { %974 = shalt.err (!%p971_p6)
}
  0xc2   : > { %s975_s11 = scalar_lea.hbm %s1386_s26, 512  ;;  %s979_s14 = scalar_lea.hbm %s1488_s6, 1024 }
  0xc3   : > { %p976_p12 = scmp.ne.s32.totalorder %s1386_s26, %s975_s11  ;;  %p980_p4 = scmp.lt.s32.totalorder %s1386_s26, %s1488_s6 }
  0xc4   : > { %p981_p2 = scmp.lt.s32.totalorder %s979_s14, %s975_s11 }
  0xc5   : > { %p977_p0 = pnand %p976_p12, %p1519_p7 }
  0xc6   : > { %p982_p5 = por %p981_p2, %p980_p4 }
  0xc7   : > { %p978_p11 = pneg %p977_p0 }
  0xc9   : > { %p983_p13 = pnand %p982_p5, %p978_p11 }
  0xcb   : > { %986 = shalt.err (!%p983_p13)
}
  0xcc   : > { %s1069_s20 = smov 128   ;;  %s1070_s1 = smov 8   ;;  %v535_v53 = vsub.f32 %v531_v49, %v1330_v27  ;;  %v533_v54 = vadd.f32 %v529_v50, %v525_v45  ;;  %v536_v55 = vsub.f32 %v532_v51, %v1332_v29  ;;  %v534_v56 = vadd.f32 %v530_v52, %v526_v48 }
  0xcd   : > { %784 = dma.vmem_to_hbm [thread:$0]  (%p1519_p7), %s1379_s22, 512, %s1386_s26, %s544_s29, %s1069_s20, %s1069_s20, %s1070_s1  }
  0xce   : > { %539 = vst [vmem:[%s1392_s18] sm:$0xff] %v535_v53  ;;  %v537_v57 = vsub.f32 %v533_v54, %v1335_v31  ;;  %540 = vst [vmem:[%s1392_s18 + $0x8] sm:$0xff] %v536_v55  ;;  %v538_v58 = vsub.f32 %v534_v56, %v1338_v33  ;;  %s1436_s29 = scalar_lea.hbm %s1489_s7, %s758_s0  ;;  %s549_s19 = scalar_lea.sflag [#allocation10], %s1297_s9 }
  0xcf   : > { %s987_s16 = scalar_lea.vmem %s1426_s17, 512  ;;  %s1071_s8 = smov [#allocation9]  }
  0xd0   : > { %541 = vst [vmem:[%s1392_s18 + $0x10] sm:$0xff] %v537_v57  ;;  %542 = vst [vmem:[%s1392_s18 + $0x18] sm:$0xff] %v538_v58  ;;  %p988_p8 = scmp.ne.s32.totalorder %s1426_s17, %s987_s16  ;;  %s991_s23 = sshll.u32 %s1071_s8, 4  ;;  %s992_s23 = int_to_ptr.vmem [resolvable:$false] %s991_s23 }
  0xd1   : > { %s993_s11 = scalar_lea.vmem %s992_s23, 1024  ;;  %p994_p3 = scmp.lt.s32.totalorder %s1426_s17, %s992_s23 }
  0xd2   : > { %p989_p10 = pnand %p988_p8, %p1519_p7  ;;  %p995_p9 = scmp.lt.s32.totalorder %s993_s11, %s987_s16 }
  0xd4   : > { %p990_p1 = pneg %p989_p10  ;;  %p996_p6 = por %p995_p9, %p994_p3 }
  0xd6   : > { %p997_p12 = pnand %p996_p6, %p990_p1 }
  0xd8   : > { %1000 = shalt.err (!%p997_p12)
}
  0xd9   : > { %s1001_s28 = scalar_lea.hbm %s1436_s29, 512  ;;  %s1005_s18 = scalar_lea.hbm %s1489_s7, 1024 }
  0xda   : > { %p1002_p0 = scmp.ne.s32.totalorder %s1436_s29, %s1001_s28  ;;  %p1006_p2 = scmp.lt.s32.totalorder %s1436_s29, %s1489_s7 }
  0xdb   : > { %p1007_p5 = scmp.lt.s32.totalorder %s1005_s18, %s1001_s28 }
  0xdc   : > { %p1003_p11 = pnand %p1002_p0, %p1519_p7 }
  0xdd   : > { %p1008_p13 = por %p1007_p5, %p1006_p2 }
  0xde   : > { %p1004_p4 = pneg %p1003_p11 }
  0xe0   : > { %p1009_p8 = pnand %p1008_p13, %p1004_p4 }
  0xe2   : > { %1012 = shalt.err (!%p1009_p8)
}
  0xe3   : > { %785 = dma.vmem_to_hbm [thread:$0]  (%p1519_p7), %s1426_s17, 512, %s1436_s29, %s549_s19, %s1069_s20, %s1069_s20, %s1070_s1  }
  0xe4 PF: > { %s593_s14 = sand.u32 1, %s1047_s24   ;;  %p1520_p10 = scmp.ne.s32.totalorder %s1506_s13, 0 }
  0xe5   : > { %p1521_p1 = scmp.ge.s32.totalorder %s1059_s27, 2  ;;  %s594_s21 = scalar_lea.sflag [#allocation4], %s593_s14 }
  0xe7   : > { %p799_p3 = pnand %p1521_p1, %p1520_p10 }
  0xe9   : > { %p800_p9 = pneg %p799_p3 }
  0xeb   : > { %1038 = dma.done.wait (%p800_p9), %s594_s21, 512  }
  0xec   : > { %1040 = vsyncadd (%p800_p9), %s594_s21, 4294966784  ;;  %s603_s10 = scalar_lea.sflag [#allocation10], %s593_s14 }
  0xed   : > { %1042 = dma.done.wait (%p800_p9), %s603_s10, 512  }
  0xee   : > { %1044 = vsyncadd (%p800_p9), %s603_s10, 4294966784  ;;  %s1522_s27 = sld [smem:[#allocation16_spill]]  ;;  %s1525_s24 = smov %s1051_s25 }
  0xef   : > { %s1523_s12 = sld [smem:[#allocation15_spill]] }
  0xf0   : > { %s1524_s26 = sld [smem:[#allocation17_spill]] }
  0xf4   : > { %p27_p7 = scmp.ge.s32.totalorder %s1522_s27, 4  }
  0xf5   : > { %s1526_s25 = smov %s1523_s12 }
  0xf6   :  { %29 = sbr.rel (!%p27_p7) target bundleno = 12 (0xc), region = 130 }
  0xfb   :  { %608 = vsyncpa [#allocation3], 1 }
  0xfc   :  { %610 = vsyncpa [#allocation3 + $0x1], 1 }
  0xfd   :  { %611 = vsyncpa [#allocation6], 1 }
  0xfe   :  { %613 = vsyncpa [#allocation6 + $0x1], 1 }
  0xff   :  { %614 = vsyncpa [#allocation4], 1 }
 0x100   :  { %616 = vsyncpa [#allocation4 + $0x1], 1 }
 0x101   :  { %617 = vsyncpa [#allocation10], 1 }
 0x102   :  { %619 = vsyncpa [#allocation10 + $0x1], 1 }

</bundles_post_ra>
